<compile_context>
chip_gen: v7x
topology: tpu7x:2x2x1
jax: 0.10.0
libtpu: 0.0.40
codegen_flags: <defaults>
</compile_context>

<pallas_src>
import jax
import jax.numpy as jnp
from jax import lax
from jax.experimental import pallas as pl
from jax.experimental.pallas import tpu as pltpu


def _pick_tile(n, candidates=(512, 256, 128)):
    """Largest candidate tile that divides n; otherwise the full extent."""
    for c in candidates:
        if n >= c and n % c == 0:
            return c
    return n


def _kernel_p_first(a_ref, x_ref, w_ref, o_ref, acc_ref):
    # F <= C: contract channels first; the N^2 contraction then runs over F.
    # a_ref: (1, TM, TK)  x_ref: (1, C, TK)  w_ref: (C, F)
    # o_ref: (1, F, TM)   acc_ref: (F, TM) f32
    k = pl.program_id(2)

    @pl.when(k == 0)
    def _():
        acc_ref[...] = jnp.zeros_like(acc_ref)

    w = w_ref[...].astype(x_ref.dtype)
    # P[f, m] = sum_c W[c, f] * x[c, m]      (tiny: C*F*TK flops)
    p = lax.dot_general(w, x_ref[0], (((0,), (0,)), ((), ())),
                        preferred_element_type=jnp.float32)
    p = p.astype(a_ref.dtype)
    # acc[f, n] += sum_m P[f, m] * A[n, m]   (dominant N^2 contraction over F)
    acc_ref[...] += lax.dot_general(p, a_ref[0], (((1,), (1,)), ((), ())),
                                    preferred_element_type=jnp.float32)

    @pl.when(k == pl.num_programs(2) - 1)
    def _():
        o_ref[0] = acc_ref[...].astype(o_ref.dtype)


def _kernel_a_first(a_ref, x_ref, w_ref, o_ref, acc_ref):
    # C < F: the N^2 contraction runs over C; apply W once at finalize.
    # a_ref: (1, TM, TK)  x_ref: (1, C, TK)  w_ref: (C, F)
    # o_ref: (1, F, TM)   acc_ref: (TM, C) f32
    k = pl.program_id(2)

    @pl.when(k == 0)
    def _():
        acc_ref[...] = jnp.zeros_like(acc_ref)

    # acc[n, c] += sum_m A[n, m] * x[c, m]   (dominant N^2 contraction over C)
    acc_ref[...] += lax.dot_general(a_ref[0], x_ref[0],
                                    (((1,), (1,)), ((), ())),
                                    preferred_element_type=jnp.float32)

    @pl.when(k == pl.num_programs(2) - 1)
    def _():
        t = acc_ref[...].astype(w_ref.dtype)
        # out[f, n] = sum_c W[c, f] * acc[n, c]
        o_ref[0] = lax.dot_general(
            w_ref[...], t, (((0,), (1,)), ((), ())),
            preferred_element_type=jnp.float32).astype(o_ref.dtype)


def graph_conv(x, A, W, *, tm=None, tk=None):
    """Graph_Conv forward.  x: (B, C, N), A: (B, N, N), W: (C, F) -> (B, F, N)."""
    B, C, N = x.shape
    Cw, F = W.shape
    assert Cw == C and A.shape == (B, N, N)

    TM = tm if tm is not None else _pick_tile(N)
    TK = tk if tk is not None else _pick_tile(N)
    assert N % TM == 0 and N % TK == 0

    # Static association choice: keep the N^2 contraction over min(C, F).
    if F <= C:
        kernel, acc_shape = _kernel_p_first, (F, TM)
    else:
        kernel, acc_shape = _kernel_a_first, (TM, C)

    itemsize = jnp.dtype(x.dtype).itemsize
    # Double-buffered input/output tiles + f32 accumulator, with headroom.
    live_bytes = (2 * itemsize * (TM * TK + C * TK + C * F + F * TM)
                  + 4 * acc_shape[0] * acc_shape[1])
    vmem_limit = int(min(64 << 20, max(4 << 20, 3 * live_bytes)))

    flops = 2 * B * N * N * min(C, F) + 2 * B * N * C * F
    # A is streamed exactly once; x is re-streamed once per row tile (ratio
    # C/TM of the A traffic, negligible), W once, output written once.
    bytes_accessed = int(itemsize * (A.size + (N // TM) * x.size
                                     + W.size + B * F * N))
    cost = pl.CostEstimate(flops=flops, transcendentals=0,
                           bytes_accessed=bytes_accessed)

    return pl.pallas_call(
        kernel,
        out_shape=jax.ShapeDtypeStruct((B, F, N), x.dtype),
        grid_spec=pltpu.PrefetchScalarGridSpec(
            num_scalar_prefetch=0,
            grid=(B, N // TM, N // TK),
            in_specs=[
                pl.BlockSpec((1, TM, TK), lambda b, i, k: (b, i, k)),  # A
                pl.BlockSpec((1, C, TK), lambda b, i, k: (b, 0, k)),   # x
                pl.BlockSpec((C, F), lambda b, i, k: (0, 0)),          # W
            ],
            out_specs=pl.BlockSpec((1, F, TM), lambda b, i, k: (b, 0, i)),
            scratch_shapes=[pltpu.VMEM(acc_shape, jnp.float32)],
        ),
        compiler_params=pltpu.CompilerParams(
            dimension_semantics=("parallel", "parallel", "arbitrary"),
            vmem_limit_bytes=vmem_limit),
        cost_estimate=cost,
    )(A, x, W)
    # TODO(synk): for tiny B/N (demo shapes) one could pack several batch
    # elements per grid step to amortize the ~0.35 us per-step overhead.


if __name__ == "__main__":
    # Small shapes consistent with the module's forward.
    B, C, N, Fout = 2, 4, 16, 8   # batch, in_features, num_nodes, out_features

    key = jax.random.PRNGKey(0)
    kx, ka, kw = jax.random.split(key, 3)

    x = jax.random.normal(kx, (B, C, N), dtype=jnp.float32)
    A = jax.random.normal(ka, (B, N, N), dtype=jnp.float32)

    # Deterministic Xavier-normal init (gain=1.0) for weight (C, F).
    std = (2.0 / (C + Fout)) ** 0.5
    W = std * jax.random.normal(kw, (C, Fout), dtype=jnp.float32)

    out = jax.block_until_ready(graph_conv(x, A, W))
    ref = jnp.einsum("bnm,bcm,cf->bfn", A, x, W)
    assert out.shape == (B, Fout, N)
    assert jnp.allclose(out, ref, atol=1e-4, rtol=1e-4)

    # Also exercise the other association branch (F <= C) and the tiled /
    # K-accumulated path (N = 384 -> 128x128 tiles, 3-step K reduction).
    C2, F2, N2 = 8, 4, 384
    x2 = jax.random.normal(kx, (B, C2, N2), dtype=jnp.float32)
    A2 = jax.random.normal(ka, (B, N2, N2), dtype=jnp.float32)
    W2 = 0.1 * jax.random.normal(kw, (C2, F2), dtype=jnp.float32)
    out2 = jax.block_until_ready(graph_conv(x2, A2, W2))
    ref2 = jnp.einsum("bnm,bcm,cf->bfn", A2, x2, W2)
    assert out2.shape == (B, F2, N2)
    assert jnp.allclose(out2, ref2, atol=1e-3, rtol=1e-3)

    print("KERNEL_OK")
</pallas_src>

<mosaic_0001>
module attributes {stable_mosaic.version = 11 : i64} {
  func.func @_kernel_a_first(%arg0: i32, %arg1: i32, %arg2: i32, %arg3: memref<1x16x16xf32, #tpu.memory_space<vmem>>, %arg4: memref<1x4x16xf32, #tpu.memory_space<vmem>>, %arg5: memref<4x8xf32, #tpu.memory_space<vmem>>, %arg6: memref<1x8x16xf32, #tpu.memory_space<vmem>>, %arg7: memref<16x4xf32, #tpu.memory_space<vmem>>) attributes {dimension_semantics = [#tpu.dimension_semantics<parallel>, #tpu.dimension_semantics<parallel>, #tpu.dimension_semantics<arbitrary>], iteration_bounds = array<i64: 2, 1, 1>, scalar_prefetch = 0 : i64, scratch_operands = 1 : i64, tpu.core_type = #tpu.core_type<tc>, window_params = [{transform_indices = @transform_0, window_bounds = array<i64: 1, 16, 16>}, {transform_indices = @transform_1, window_bounds = array<i64: 1, 4, 16>}, {pipeline_mode = #tpu.pipeline_mode<synchronous>, transform_indices = @transform_2, window_bounds = array<i64: 4, 8>}, {transform_indices = @transform_3, window_bounds = array<i64: 1, 8, 16>}]} {
    %c0_i32 = arith.constant 0 : i32
    %0 = arith.cmpi eq, %arg2, %c0_i32 : i32
    %1 = arith.extui %0 : i1 to i32
    %c0_i32_0 = arith.constant 0 : i32
    %2 = arith.cmpi ne, %1, %c0_i32_0 : i32
    scf.if %2 {
      %cst_12 = arith.constant 0.000000e+00 : f32
      %14 = vector.broadcast %cst_12 : f32 to vector<16x4xf32>
      %c0_13 = arith.constant 0 : index
      %c0_14 = arith.constant 0 : index
      %15 = vector.load %arg7[%c0_13, %c0_14] : memref<16x4xf32, #tpu.memory_space<vmem>>, vector<16x4xf32>
      tpu.vector_store %arg7[%c0_13, %c0_14], %14 {strides = array<i32>} : memref<16x4xf32, #tpu.memory_space<vmem>>, vector<16x4xf32>,
    } else {
    }
    %c0 = arith.constant 0 : index
    %c0_1 = arith.constant 0 : index
    %3 = vector.load %arg7[%c0, %c0_1] : memref<16x4xf32, #tpu.memory_space<vmem>>, vector<16x4xf32>
    %c0_2 = arith.constant 0 : index
    %c0_3 = arith.constant 0 : index
    %c0_4 = arith.constant 0 : index
    %4 = vector.load %arg3[%c0_2, %c0_3, %c0_4] : memref<1x16x16xf32, #tpu.memory_space<vmem>>, vector<1x16x16xf32>
    %5 = vector.shape_cast %4 : vector<1x16x16xf32> to vector<16x16xf32>
    %c0_5 = arith.constant 0 : index
    %c0_6 = arith.constant 0 : index
    %c0_7 = arith.constant 0 : index
    %6 = vector.load %arg4[%c0_5, %c0_6, %c0_7] : memref<1x4x16xf32, #tpu.memory_space<vmem>>, vector<1x4x16xf32>
    %7 = vector.shape_cast %6 : vector<1x4x16xf32> to vector<4x16xf32>
    %cst = arith.constant dense<0.000000e+00> : vector<16x4xf32>
    %8 = tpu.matmul %5, %7, %cst {dimension_numbers = #tpu.dot_dimension_numbers<[1], [1], [0], [0], [0, 0, 1, 0], [], []>} : vector<16x16xf32>, vector<4x16xf32>, vector<16x4xf32> -> vector<16x4xf32>
    %9 = arith.addf %3, %8 : vector<16x4xf32>
    %c0_8 = arith.constant 0 : index
    %c0_9 = arith.constant 0 : index
    %10 = vector.load %arg7[%c0_8, %c0_9] : memref<16x4xf32, #tpu.memory_space<vmem>>, vector<16x4xf32>
    tpu.vector_store %arg7[%c0_8, %c0_9], %9 {strides = array<i32>} : memref<16x4xf32, #tpu.memory_space<vmem>>, vector<16x4xf32>,
    %c0_i32_10 = arith.constant 0 : i32
    %11 = arith.cmpi eq, %arg2, %c0_i32_10 : i32
    %12 = arith.extui %11 : i1 to i32
    %c0_i32_11 = arith.constant 0 : i32
    %13 = arith.cmpi ne, %12, %c0_i32_11 : i32
    scf.if %13 {
      %c0_12 = arith.constant 0 : index
      %c0_13 = arith.constant 0 : index
      %14 = vector.load %arg7[%c0_12, %c0_13] : memref<16x4xf32, #tpu.memory_space<vmem>>, vector<16x4xf32>
      %c0_14 = arith.constant 0 : index
      %c0_15 = arith.constant 0 : index
      %15 = vector.load %arg5[%c0_14, %c0_15] : memref<4x8xf32, #tpu.memory_space<vmem>>, vector<4x8xf32>
      %cst_16 = arith.constant dense<0.000000e+00> : vector<8x16xf32>
      %16 = tpu.matmul %15, %14, %cst_16 {dimension_numbers = #tpu.dot_dimension_numbers<[0], [1], [1], [0], [0, 1, 1, 0], [], []>} : vector<4x8xf32>, vector<16x4xf32>, vector<8x16xf32> -> vector<8x16xf32>
      %c0_17 = arith.constant 0 : index
      %c0_18 = arith.constant 0 : index
      %c0_19 = arith.constant 0 : index
      %17 = vector.load %arg6[%c0_17, %c0_18, %c0_19] : memref<1x8x16xf32, #tpu.memory_space<vmem>>, vector<1x8x16xf32>
      %18 = vector.shape_cast %17 : vector<1x8x16xf32> to vector<8x16xf32>
      %19 = vector.shape_cast %16 : vector<8x16xf32> to vector<1x8x16xf32>
      tpu.vector_store %arg6[%c0_17, %c0_18, %c0_19], %19 {strides = array<i32>} : memref<1x8x16xf32, #tpu.memory_space<vmem>>, vector<1x8x16xf32>,
    } else {
    }
    return
  }
  func.func @transform_0(%arg0: i32, %arg1: i32, %arg2: i32) -> (i32, i32, i32) {
    %c0_i32 = arith.constant 0 : i32
    return %arg0, %arg1, %arg2 : i32, i32, i32
  }
  func.func @transform_1(%arg0: i32, %arg1: i32, %arg2: i32) -> (i32, i32, i32) {
    %c0_i32 = arith.constant 0 : i32
    %c0_i32_0 = arith.constant 0 : i32
    return %arg0, %c0_i32, %arg2 : i32, i32, i32
  }
  func.func @transform_2(%arg0: i32, %arg1: i32, %arg2: i32) -> (i32, i32) {
    %c0_i32 = arith.constant 0 : i32
    %c0_i32_0 = arith.constant 0 : i32
    %c0_i32_1 = arith.constant 0 : i32
    return %c0_i32, %c0_i32_0 : i32, i32
  }
  func.func @transform_3(%arg0: i32, %arg1: i32, %arg2: i32) -> (i32, i32, i32) {
    %c0_i32 = arith.constant 0 : i32
    %c0_i32_0 = arith.constant 0 : i32
    return %arg0, %c0_i32, %arg1 : i32, i32, i32
  }
}

</mosaic_0001>

<bundles_post_ra>
// kernel: tpu_custom_call.1
= control target key start
LH: loop header
LB: loop body
LE: loop exit
PB: predicated region body
PF: predicated region fallthrough
CT: control target
= control target key end

     0   :  { %8 = vsyncpa [#allocation4], 0  ;;  %s1128_s0 = inlined_call_operand.hbm [shape: f32[2,16,16], index: 0, kind: input, shape index: {}]   ;;  %s1129_s1 = inlined_call_operand.hbm [shape: f32[2,4,16], index: 1, kind: input, shape index: {}]   ;;  %s1130_s2 = inlined_call_operand.vmem [shape: f32[4,8], index: 2, kind: input, shape index: {}]   ;;  %s1131_s3 = inlined_call_operand.hbm [shape: f32[2,8,16], index: 3, kind: output, shape index: {}]  }
   0x1   :  { %10 = vsyncpa [#allocation4 + $0x1], 0 }
   0x2   :  { %11 = vsyncpa [#allocation7], 0 }
   0x3   :  { %13 = vsyncpa [#allocation7 + $0x1], 0 }
   0x4   :  { %14 = vsyncpa [#allocation5], 0 }
   0x5   :  { %16 = vsyncpa [#allocation5 + $0x1], 0  ;;  %s897_s12 = smov 0   ;;  %s899_s13 = smov 0  }
   0x6   :  { %s901_s14 = smov 0   ;;  %s903_s15 = smov 0  }
   0x7   :  { %s905_s16 = smov 0   ;;  %s907_s17 = smov 0  }
   0x8 LB: > { %s603_s18 = sadd.s32 4294967295, %s867_s17   ;;  %s604_s19 = sadd.s32 4294967294, %s867_s17   ;;  %s867_s17 = sphi %s907_s17, %s22_s17   ;;  %s863_s16 = sphi %s905_s16, %s1150_s16   ;;  %s859_s15 = sphi %s903_s15, %s1149_s15   ;;  %s855_s14 = sphi %s901_s14, %s1148_s14   ;;  %s851_s13 = sphi %s899_s13, %s1147_s13   ;;  %s847_s12 = sphi %s897_s12, %s1146_s12  }
   0x9   : > { %s41_s20 = sadd.s32 1, %s863_s16  ;;  %s52_s21 = sadd.s32 1, %s855_s14 }
   0xa   : > { %p43_p0 = scmp.ge.s32.totalorder %s41_s20, 2  ;;  %p59_p1 = scmp.ne.s32.totalorder %s855_s14, %s851_s13 }
   0xb   : > { %p60_p2 = scmp.eq.s32.totalorder %s867_s17, 0  ;;  %p65_p3 = scmp.ne.s32.totalorder %s851_s13, %s847_s12 }
   0xc   : > { %s1152_s20 = smov (%p43_p0, %s41_s20), 0  ;;  %p66_p5 = scmp.eq.s32.totalorder %s603_s18, 0 }
   0xd   : > { %p938_p4 = por %p60_p2, %p59_p1  ;;  %s45_s23 = ssub.s32 %s863_s16, %s1152_s20 }
   0xe   : > { %p140_p6 = scmp.eq.s32.totalorder %s603_s18, 1  ;;  %p50_p7 = scmp.eq.s32.totalorder %s45_s23, 0 }
   0xf   : > { %p944_p8 = por %p66_p5, %p65_p3  ;;  %p146_p10 = scmp.eq.s32.totalorder %s604_s19, 1 }
  0x10   : > { %p948_p9 = por %p140_p6, %p59_p1  ;;  %p666_p13 = scmp.lt.s32.totalorder %s867_s17, 2 }
  0x11   : > { %s1135_s24 = scalar_select %p944_p8, 1, 0 }
  0x12   : > { %s1136_s25 = scalar_select %p948_p9, 1, 0 }
  0x13   : > { %s953_s26 = scalar_select %p50_p7, %s855_s14, %s52_s21  }
  0x14   : > { %p955_p11 = por %p146_p10, %p65_p3  ;;  %s962_s28 = sand.u32 1, %s855_s14  }
  0x15   : > { %s607_s29 = sshll.u32 %s962_s28, 4  ;;  %s626_s30 = sshll.u32 %s863_s16, 8 }
  0x16   : > { %s1137_s27 = scalar_select %p955_p11, 1, 0 }
  0x17   : > { %s969_s6 = scalar_lea.hbm %s1128_s0, %s626_s30  ;;  %s173_s7 = scalar_lea.vmem [#allocation3], %s607_s29 }
  0x18   : > { %s183_s8 = sshll.u32 %s173_s7, 4  ;;  %p975_p0 = pnand %p666_p13, %p938_p4  ;;  %s971_s8 = int_to_ptr.vmem [resolvable:$true] %s183_s8 }
  0x19   : > { %s170_s10 = scalar_lea.sflag [#allocation4], %s962_s28  ;;  %s721_s11 = scalar_lea.hbm %s969_s6, 256 }
  0x1a   : > { %p722_p2 = scmp.ne.s32.totalorder %s969_s6, %s721_s11  ;;  %p723_p3 = pneg %p975_p0 }
  0x1b   : > { %s726_s21 = scalar_lea.hbm %s1128_s0, 512  ;;  %p727_p4 = scmp.lt.u32.totalorder %s969_s6, %s1128_s0 }
  0x1c   : > { %p724_p5 = pnand %p723_p3, %p722_p2  ;;  %p728_p7 = scmp.lt.u32.totalorder %s726_s21, %s721_s11 }
  0x1d   : > { %p730_p13 = scmp.lt.u32.totalorder %s721_s11, %s969_s6 }
  0x1e   : > { %p725_p6 = pneg %p724_p5  ;;  %p729_p10 = por %p728_p7, %p727_p4 }
  0x20   : > { %p731_p12 = por %p730_p13, %p729_p10 }
  0x22   : > { %p732_p1 = pnand %p731_p12, %p725_p6 }
  0x24   : > { %735 = shalt.err (!%p732_p1)
}
  0x25   : > { %s736_s29 = scalar_lea.vmem %s971_s8, 256  ;;  %s869_s30 = smov [#allocation3]  }
  0x26   : > { %p737_p2 = scmp.ne.s32.totalorder %s971_s8, %s736_s29  ;;  %s741_s4 = sshll.u32 %s869_s30, 4  ;;  %s742_s4 = int_to_ptr.vmem [resolvable:$false] %s741_s4 }
  0x27   : > { %s743_s5 = scalar_lea.vmem %s742_s4, 512  ;;  %p744_p9 = scmp.lt.s32.totalorder %s971_s8, %s742_s4 }
  0x28   : > { %p739_p5 = pnand %p737_p2, %p723_p3  ;;  %p745_p4 = scmp.lt.s32.totalorder %s743_s5, %s736_s29 }
  0x2a   : > { %p740_p11 = pneg %p739_p5  ;;  %p746_p7 = por %p745_p4, %p744_p9 }
  0x2c   : > { %p747_p10 = pnand %p746_p7, %p740_p11 }
  0x2e   : > { %750 = shalt.err (!%p747_p10)
}
  0x2f   : > { %s870_s7 = smov 128   ;;  %s871_s11 = smov 8  }
  0x30   : > { %658 = dma.hbm_to_vmem [thread:$0]  (!%p975_p0), %s969_s6, 256, %s971_s8, %s170_s10, %s870_s7, %s870_s7, %s871_s11  }
  0x31   : > { %p210_p12 = scmp.lt.s32.totalorder %s867_s17, 3  ;;  %s610_s18 = sshll.u32 %s962_s28, 2 }
  0x32   : > { %s611_s19 = sshll.u32 %s863_s16, 6  ;;  %p1139_p9 = scmp.ge.s32.totalorder %s867_s17, 1 }
  0x33   : > { %s1020_s29 = scalar_lea.hbm %s1129_s1, %s611_s19  ;;  %s197_s30 = scalar_lea.vmem [#allocation6], %s610_s18 }
  0x34   : > { %p1013_p11 = pnand %p1139_p9, %p210_p12  ;;  %s205_s4 = sshll.u32 %s197_s30, 4  ;;  %s206_s4 = int_to_ptr.vmem [resolvable:$true] %s205_s4 }
  0x35   : > { %s194_s6 = scalar_lea.sflag [#allocation7], %s962_s28  ;;  %s751_s8 = scalar_lea.hbm %s1020_s29, 64 }
  0x36   : > { %s1140_s21 = scalar_select %p1013_p11, 1, 0 }
  0x37   : > { %p752_p1 = scmp.ne.s32.totalorder %s1020_s29, %s751_s8  ;;  %s756_s7 = scalar_lea.hbm %s1129_s1, 128 }
  0x38   : > { %p757_p2 = scmp.lt.u32.totalorder %s1020_s29, %s1129_s1  ;;  %p758_p5 = scmp.lt.u32.totalorder %s756_s7, %s751_s8 }
  0x39   : > { %p754_p6 = pnand %p752_p1, %p723_p3  ;;  %p760_p7 = scmp.lt.u32.totalorder %s751_s8, %s1020_s29 }
  0x3a   : > { %p759_p4 = por %p758_p5, %p757_p2 }
  0x3b   : > { %p755_p13 = pneg %p754_p6 }
  0x3c   : > { %p761_p10 = por %p760_p7, %p759_p4 }
  0x3e   : > { %p762_p12 = pnand %p761_p10, %p755_p13 }
  0x40   : > { %765 = shalt.err (!%p762_p12)
}
  0x41   : > { %s766_s28 = scalar_lea.vmem %s206_s4, 64  ;;  %s872_s18 = smov [#allocation6]  }
  0x42   : > { %p767_p9 = scmp.ne.s32.totalorder %s206_s4, %s766_s28  ;;  %s771_s22 = sshll.u32 %s872_s18, 4  ;;  %s772_s22 = int_to_ptr.vmem [resolvable:$false] %s771_s22 }
  0x43   : > { %s773_s23 = scalar_lea.vmem %s772_s22, 128  ;;  %p774_p8 = scmp.lt.s32.totalorder %s206_s4, %s772_s22 }
  0x44   : > { %p769_p1 = pnand %p767_p9, %p723_p3  ;;  %p775_p11 = scmp.lt.s32.totalorder %s773_s23, %s766_s28 }
  0x46   : > { %p770_p6 = pneg %p769_p1  ;;  %p776_p2 = por %p775_p11, %p774_p8 }
  0x48   : > { %p777_p5 = pnand %p776_p2, %p770_p6 }
  0x4a   : > { %780 = shalt.err (!%p777_p5)
}
  0x4b   : > { %661 = dma.hbm_to_vmem [thread:$0]  (!%p975_p0), %s1020_s29, 64, %s206_s4, %s194_s6  }
  0x4c   : > { %p1141_p13 = scmp.ne.s32.totalorder %s1140_s21, 0 }
  0x4d   : > { %s1045_s30 = sand.u32 (!%p1141_p13), 1, %s851_s13   ;;  %p1142_p3 = scmp.ne.s32.totalorder (!%p1141_p13), %s1135_s24, 0 }
  0x4e   : > { %214 = sbr.rel (%p1141_p13) target bundleno = 552 (0x228), region = 32  ;;  %s613_s8 = sshll.u32 (!%p1141_p13), %s1045_s30, 4 }
  0x4f   : > { %s217_s10 = scalar_lea.sflag (!%p1141_p13), [#allocation4], %s1045_s30  ;;  %s220_s5 = scalar_lea.vmem (!%p1141_p13), [#allocation3], %s613_s8 }
  0x55   : > { %834 = dma.done.wait (%p1142_p3), %s217_s10, 256  }
  0x56   : > { %836 = vsyncadd (%p1142_p3), %s217_s10, 4294967040  ;;  %s614_s9 = sshll.u32 %s1045_s30, 2  ;;  %s226_s21 = scalar_lea.sflag [#allocation7], %s1045_s30 }
  0x57   : > { %s229_s29 = scalar_lea.vmem [#allocation6], %s614_s9 }
  0x58   : > { %838 = dma.done.wait (%p1142_p3), %s226_s21, 64  }
  0x59   : > { %840 = vsyncadd (%p1142_p3), %s226_s21, 4294967232  ;;  %vm262_vm0 = vcmask 31744   ;;  %v873_v0 = vmov 0.0   ;;  %vm270_vm1 = vcmask 130048   ;;  %v269_v1 = vld [vmem:[%s229_s29] sm:$0xf] }
  0x5a   : > { %264 = vst.msk [vmem:[#allocation2 + $0x8] sm:$0xff] %vm262_vm0, %v873_v0  ;;  %263 = vst.msk [vmem:[#allocation2] sm:$0xff] %vm262_vm0, %v873_v0  ;;  %v267_v2 = vld [vmem:[%s220_s5] sm:$0xff]  ;;  %633 = vmatprep.subr.msk.mxu0 %vm270_vm1, %v269_v1  ;;  %v268_v4 = vld [vmem:[%s220_s5 + $0x8] sm:$0xff]  ;;  %v874_v5 = vmov 0.0|0.0   ;;  %vm875_vm2 = vmmov 0  }
  0x5b   : > { %635 = vmatprep.mubr.msk.f32.mxu0 %vm270_vm1, %v267_v2  ;;  %v365_v3 = vld [vmem:[%s1130_s2] sm:$0xf]  ;;  %634 = vmatpush3.xpose.msk.msra.mxu0 %vm270_vm1, %v269_v1  ;;  %vm647_vm3 = vmpackc.low %vm262_vm0, %vm262_vm0  ;;  %s615_s24 = sshll.u32 %s1045_s30, 3  ;;  %s623_s7 = sshll.u32 %s859_s15, 7 }
  0x5c   : > { %366 = vxpose.xlu0.b32.start.end [1/1] (short) (narrow) %v365_v3, 8  ;;  %645 = vmatprep.subr.bf16.mxu1 %v874_v5  ;;  %s256_s11 = scalar_lea.vmem [#allocation8], %s615_s24  ;;  %s1078_s22 = scalar_lea.hbm %s1131_s3, %s623_s7 }
  0x5d   : > { %642 = vmatprep.mubr.msk.f32.mxu1 %vm875_vm2, %v873_v0  ;;  %s493_s19 = sshll.u32 %s256_s11, 4  ;;  %s479_s23 = scalar_lea.sflag [#allocation5], %s1045_s30  ;;  %s1080_s19 = int_to_ptr.vmem [resolvable:$true] %s493_s19 }
  0x5e   : > { %636 = vmatmul.mubr.msk.f32.vlgmr.msra.gmra.mrb[0].mxu0 %vm270_vm1, %v268_v4  ;;  %s781_s8 = scalar_lea.vmem %s1080_s19, 128  ;;  %p1143_p0 = scmp.ne.s32.totalorder %s1136_s25, 0 }
  0x5f   : > { %p782_p8 = scmp.ne.s32.totalorder %s1080_s19, %s781_s8  ;;  %s876_s15 = smov [#allocation8]  }
  0x60   : > { %s785_s10 = sshll.u32 %s876_s15, 4  ;;  %s786_s10 = int_to_ptr.vmem [resolvable:$false] %s785_s10 }
  0x61   : > { %v266_v6 = vld [vmem:[#allocation2 + $0x8] sm:$0xff]  ;;  %v265_v7 = vld [vmem:[#allocation2] sm:$0xff]  ;;  %p783_p11 = pnand %p782_p8, %p1143_p0  ;;  %s787_s5 = scalar_lea.vmem %s786_s10, 256 }
  0x62   : > { %p788_p7 = scmp.lt.s32.totalorder %s1080_s19, %s786_s10  ;;  %p789_p10 = scmp.lt.s32.totalorder %s787_s5, %s781_s8 }
  0x63   : > { %p784_p4 = pneg %p783_p11 }
  0x64   : > { %p790_p12 = por %p789_p10, %p788_p7 }
  0x66   : > { %p791_p9 = pnand %p790_p12, %p784_p4 }
  0xdc   : > { %v382_v15 = vpop.trf.xlu0 }
 0x131   : > { %v637_v8 = vpop.f32.mrb[0].mxu0 }
 0x132   : > { %v356_v9 = vadd.f32 %v637_v8, %v266_v6  ;;  %v346_v10 = vpop.f32.mrb[1].mxu0 }
 0x133   : > { %v355_v11 = vadd.f32 %v346_v10, %v265_v7 }
 0x134   : > { %359 = vst.msk [vmem:[#allocation2 + $0x8] sm:$0xff] %vm262_vm0, %v356_v9 }
 0x135   : > { %358 = vst.msk [vmem:[#allocation2] sm:$0xff] %vm262_vm0, %v355_v11 }
 0x13b   : > { %v364_v12 = vld [vmem:[#allocation2 + $0x8] sm:$0xff] }
 0x13c   : > { %v363_v13 = vld [vmem:[#allocation2] sm:$0xff] }
 0x13d   : > { %v646_v14 = vpack.c.bf16 %v364_v12, %v363_v13 }
 0x13f   : > { %648 = vmatpush3.bf16.xpose.msk.msra.mxu1 %vm647_vm3, %v646_v14 }
 0x146   : > { %643 = vmatmul.mubr.msk.f32.vlgmr.msra.gmra.mrb[0].mxu1 %vm262_vm0, %v382_v15 }
 0x219   : > { %v473_v16 = vpop.f32.mrb[0].mxu1 }
 0x21a   : > { %477 = vst.msk [vmem:[%s256_s11] sm:$0xff] %vm270_vm1, %v473_v16  ;;  %v644_v17 = vpop.f32.mrb[1].mxu1 }
 0x21b   : > { %794 = shalt.err (!%p791_p9)
}
 0x21c   : > { %s795_s30 = scalar_lea.hbm %s1078_s22, 128  ;;  %s799_s29 = scalar_lea.hbm %s1131_s3, 256 }
 0x21d   : > { %p796_p1 = scmp.ne.s32.totalorder %s1078_s22, %s795_s30  ;;  %p800_p5 = scmp.lt.u32.totalorder %s1078_s22, %s1131_s3 }
 0x21e   : > { %p801_p13 = scmp.lt.u32.totalorder %s799_s29, %s795_s30  ;;  %p803_p8 = scmp.lt.u32.totalorder %s795_s30, %s1078_s22 }
 0x21f   : > { %p797_p6 = pnand %p796_p1, %p1143_p0 }
 0x220   : > { %p802_p3 = por %p801_p13, %p800_p5 }
 0x221   : > { %p798_p2 = pneg %p797_p6 }
 0x222   : > { %p804_p11 = por %p803_p8, %p802_p3 }
 0x224   : > { %p805_p4 = pnand %p804_p11, %p798_p2 }
 0x226   : > { %808 = shalt.err (!%p805_p4)
}
 0x227   : > { %653 = dma.vmem_to_hbm [thread:$0]  (%p1143_p0), %s1080_s19, 128, %s1078_s22, %s479_s23  }
 0x228 PF: > { %s505_s24 = sand.u32 1, %s847_s12   ;;  %p1144_p7 = scmp.ne.s32.totalorder %s1137_s27, 0 }
 0x229   : > { %p1145_p10 = scmp.ge.s32.totalorder %s867_s17, 2  ;;  %s506_s7 = scalar_lea.sflag [#allocation5], %s505_s24 }
 0x22b   : > { %p663_p12 = pnand %p1145_p10, %p1144_p7 }
 0x22d   : > { %842 = dma.done.wait (!%p663_p12), %s506_s7, 128  }
 0x22e   : > { %844 = vsyncadd (!%p663_p12), %s506_s7, 4294967168  ;;  %s22_s17 = sadd.s32 1, %s867_s17   ;;  %s1146_s12 = smov %s851_s13 }
 0x22f   : > { %p19_p9 = scmp.ge.s32.totalorder %s22_s17, 4   ;;  %s1147_s13 = smov %s855_s14 }
 0x230   : > { %s1148_s14 = smov %s953_s26  ;;  %s1149_s15 = smov %s863_s16 }
 0x231   : > { %s1150_s16 = smov %s1152_s20  ;;  %21 = sbr.rel (!%p19_p9) target bundleno = 8 (0x8), region = 98 }
 0x238   :  { %511 = vsyncpa [#allocation4], 1 }
 0x239   :  { %513 = vsyncpa [#allocation4 + $0x1], 1 }
 0x23a   :  { %514 = vsyncpa [#allocation7], 1 }
 0x23b   :  { %516 = vsyncpa [#allocation7 + $0x1], 1 }
 0x23c   :  { %517 = vsyncpa [#allocation5], 1 }
 0x23d   :  { %519 = vsyncpa [#allocation5 + $0x1], 1 }

</bundles_post_ra>
